<compile_context>
chip_gen: v7x
topology: tpu7x:2x2x1
jax: 0.10.0
libtpu: 0.0.40
codegen_flags: <defaults>
</compile_context>

<pallas_src>
import jax
import jax.numpy as jnp
from jax.experimental import pallas as pl
from jax.experimental.pallas import tpu as pltpu


# ----------------------------------------------------------------------------
# Kernels
# ----------------------------------------------------------------------------
def _fused_kernel(x1_ref, x2_ref, w1a_ref, w1b_ref, scale_ref, bias_ref,
                  wa_ref, wbt_ref, o_ref):
    # x1_ref: (Bt, C1, HW)   x2_ref: (Bt, C2, HW)   o_ref: (Bt, Cout, HW)
    # w1a_ref: (Cout, C1)    w1b_ref: (Cout, C2)
    # scale_ref / bias_ref: (Cout, 1) folded eval-mode BN
    # wa_ref: (Cout, Cmid)   wbt_ref: (Cout, Cmid)  (= wb^T)
    bt = x1_ref.shape[0]

    # Tiny shared weights: load once, outside the image loop.
    w1a = w1a_ref[...]
    w1b = w1b_ref[...]
    scale = scale_ref[...]
    bias = bias_ref[...]
    wa = wa_ref[...]
    wbt = wbt_ref[...]

    def body(b, carry):
        # 1x1 conv on the (implicit) concat == sum of two MXU matmuls,
        # channel-major so HW stays lane-dense.
        fm = (jnp.dot(w1a, x1_ref[b], preferred_element_type=jnp.float32)
              + jnp.dot(w1b, x2_ref[b], preferred_element_type=jnp.float32))
        # folded BN + ReLU (VPU, (Cout,1) column broadcast over lanes)
        fm = jnp.maximum(fm * scale + bias, 0.0)                      # (Cout, HW)

        # SE branch: avg-pool -> 1x1 -> ReLU -> 1x1 -> sigmoid (XLU/EUP).
        pooled = jnp.mean(fm, axis=1, keepdims=True)                  # (Cout, 1)
        h = jnp.maximum(jnp.sum(wa * pooled, axis=0, keepdims=True), 0.0)  # (1, Cmid)
        se = jax.nn.sigmoid(jnp.sum(wbt * h, axis=1, keepdims=True))  # (Cout, 1)

        # output = fm + fm * se == fm * (1 + se)
        o_ref[b] = fm * (1.0 + se)
        return carry

    jax.lax.fori_loop(0, bt, body, 0)


def _fm_pool_kernel(x1_ref, x2_ref, w1a_ref, w1b_ref, scale_ref, bias_ref,
                    fm_ref, psum_ref):
    # HW-tiled pass 1: fm tile + running pooled sum (output-resident accumulator).
    # x1_ref: (1, C1, Thw)  fm_ref: (1, Cout, Thw)  psum_ref: (1, Cout, 1)
    h = pl.program_id(1)

    @pl.when(h == 0)
    def _():
        psum_ref[...] = jnp.zeros_like(psum_ref)

    fm = (jnp.dot(w1a_ref[...], x1_ref[0], preferred_element_type=jnp.float32)
          + jnp.dot(w1b_ref[...], x2_ref[0], preferred_element_type=jnp.float32))
    fm = jnp.maximum(fm * scale_ref[...] + bias_ref[...], 0.0)        # (Cout, Thw)
    fm_ref[0] = fm
    psum_ref[0] += jnp.sum(fm, axis=1, keepdims=True)                 # running sum


def _gate_kernel(fm_ref, se_ref, o_ref):
    # HW-tiled pass 2: out = fm * (1 + se)
    o_ref[0] = fm_ref[0] * (1.0 + se_ref[0])


# ----------------------------------------------------------------------------
# Tile-size / VMEM heuristics
# ----------------------------------------------------------------------------
def _vmem_budget():
    """Per-generation (block budget, vmem_limit_bytes)."""
    cap = None
    try:
        info = pltpu.get_tpu_info()
        cap = getattr(info, "vmem_capacity_bytes", None)
    except Exception:
        cap = None
    if cap is None:
        cap = 64 << 20                       # conservative: assume v7x-sized VMEM
    if cap >= (100 << 20):                   # v5e / v6e: 128 MiB physical
        return 80 << 20, 100 << 20
    return 22 << 20, 44 << 20                # v7x: 64 MiB physical per TC


def _pick_batch_tile(n, per_img_bytes, budget_bytes,
                     good_block_bytes=4 << 20, target_block_bytes=16 << 20):
    """Largest divisor Bt of n whose double-buffered in+out block fits the
    budget; prefers blocks past the roofline knee, then >=2 (and even) grid
    steps so both v7x TensorCores get work.  Returns None if even one image
    does not fit (caller falls back to the HW-tiled path)."""
    best, best_key = None, None
    for d in range(1, n + 1):
        if n % d:
            continue
        block = d * per_img_bytes
        if block > budget_bytes:
            break                            # block grows monotonically with d
        steps = n // d
        key = (
            min(block, good_block_bytes),    # 1) reach the measured roofline knee
            (steps >= 2) or (n < 2),         # 2) keep both v7x TCs busy
            (steps % 2 == 0) or (steps == 1),  # 3) even split across 2 TCs
            min(block, target_block_bytes),  # 4) keep growing block up to target
            -steps,                          # 5) otherwise fewest grid steps
        )
        if best_key is None or key > best_key:
            best, best_key = d, key
    return best


def _pick_hw_tile(hw, row_bytes, budget_bytes, max_tile=None):
    """Largest multiple-of-128 divisor of hw whose double-buffered block fits."""
    best = None
    t = 128
    while t <= hw:
        if (hw % t == 0 and t * row_bytes <= budget_bytes
                and (max_tile is None or t <= max_tile)):
            best = t
        t += 128
    return best


# ----------------------------------------------------------------------------
# pallas_call wrappers
# ----------------------------------------------------------------------------
def _feature_fusion_fused(x1r, x2r, w1a, w1b, scale, bias, wa, wbt, bt,
                          vmem_limit):
    N, C1, HW = x1r.shape
    C2 = x2r.shape[1]
    Cout = w1a.shape[0]
    Cmid = wa.shape[1]

    return pl.pallas_call(
        _fused_kernel,
        out_shape=jax.ShapeDtypeStruct((N, Cout, HW), jnp.float32),
        grid_spec=pltpu.PrefetchScalarGridSpec(
            num_scalar_prefetch=0,
            grid=(N // bt,),
            in_specs=[
                pl.BlockSpec((bt, C1, HW), lambda b: (b, 0, 0)),
                pl.BlockSpec((bt, C2, HW), lambda b: (b, 0, 0)),
                pl.BlockSpec((Cout, C1), lambda b: (0, 0)),
                pl.BlockSpec((Cout, C2), lambda b: (0, 0)),
                pl.BlockSpec((Cout, 1), lambda b: (0, 0)),
                pl.BlockSpec((Cout, 1), lambda b: (0, 0)),
                pl.BlockSpec((Cout, Cmid), lambda b: (0, 0)),
                pl.BlockSpec((Cout, Cmid), lambda b: (0, 0)),
            ],
            out_specs=pl.BlockSpec((bt, Cout, HW), lambda b: (b, 0, 0)),
        ),
        compiler_params=pltpu.CompilerParams(
            dimension_semantics=("parallel",),
            vmem_limit_bytes=vmem_limit,
        ),
    )(x1r, x2r, w1a, w1b, scale, bias, wa, wbt)


def _feature_fusion_tiled(x1r, x2r, w1a, w1b, scale, bias, wa, wb, thw,
                          vmem_limit):
    N, C1, HW = x1r.shape
    C2 = x2r.shape[1]
    Cout = w1a.shape[0]
    n_hw = HW // thw

    # Pass 1: fm tiles + pooled running sum (accumulated in a resident output
    # block across the "arbitrary" HW axis, divided by the true H*W below).
    fm, psum = pl.pallas_call(
        _fm_pool_kernel,
        out_shape=(jax.ShapeDtypeStruct((N, Cout, HW), jnp.float32),
                   jax.ShapeDtypeStruct((N, Cout, 1), jnp.float32)),
        grid_spec=pltpu.PrefetchScalarGridSpec(
            num_scalar_prefetch=0,
            grid=(N, n_hw),
            in_specs=[
                pl.BlockSpec((1, C1, thw), lambda n, h: (n, 0, h)),
                pl.BlockSpec((1, C2, thw), lambda n, h: (n, 0, h)),
                pl.BlockSpec((Cout, C1), lambda n, h: (0, 0)),
                pl.BlockSpec((Cout, C2), lambda n, h: (0, 0)),
                pl.BlockSpec((Cout, 1), lambda n, h: (0, 0)),
                pl.BlockSpec((Cout, 1), lambda n, h: (0, 0)),
            ],
            out_specs=[
                pl.BlockSpec((1, Cout, thw), lambda n, h: (n, 0, h)),
                pl.BlockSpec((1, Cout, 1), lambda n, h: (n, 0, 0)),
            ],
        ),
        compiler_params=pltpu.CompilerParams(
            dimension_semantics=("parallel", "arbitrary"),
            vmem_limit_bytes=vmem_limit,
        ),
    )(x1r, x2r, w1a, w1b, scale, bias)

    # Tiny SE MLP on (N, Cout): negligible work, done by XLA between the passes.
    pooled = psum[:, :, 0] / float(HW)                      # true mean
    hmid = jnp.maximum(pooled @ wa, 0.0)                    # (N, Cmid)
    se = jax.nn.sigmoid(hmid @ wb).reshape(N, Cout, 1)      # (N, Cout, 1)

    # Pass 2: stream fm and apply the gate.
    return pl.pallas_call(
        _gate_kernel,
        out_shape=jax.ShapeDtypeStruct((N, Cout, HW), jnp.float32),
        grid_spec=pltpu.PrefetchScalarGridSpec(
            num_scalar_prefetch=0,
            grid=(N, n_hw),
            in_specs=[
                pl.BlockSpec((1, Cout, thw), lambda n, h: (n, 0, h)),
                pl.BlockSpec((1, Cout, 1), lambda n, h: (n, 0, 0)),
            ],
            out_specs=pl.BlockSpec((1, Cout, thw), lambda n, h: (n, 0, h)),
        ),
        compiler_params=pltpu.CompilerParams(
            dimension_semantics=("parallel", "arbitrary"),
            vmem_limit_bytes=vmem_limit,
        ),
    )(fm, se)


def feature_fusion(x1, x2, params, *, force_path=None, hw_tile=None):
    """x1, x2: NCHW float32 arrays with the same N, H, W."""
    N, C1, H, W = x1.shape
    C2 = x2.shape[1]
    Cin = C1 + C2
    HW = H * W

    w1 = params["w1"]                      # (Cin, Cout)
    Cout = w1.shape[1]

    # Tiny weight re-layouts (Cout x C matrices): negligible, done once by XLA.
    w1a = jnp.transpose(w1[:C1])           # (Cout, C1)
    w1b = jnp.transpose(w1[C1:])           # (Cout, C2)
    wa = params["wa"]                      # (Cout, Cmid)
    wb = params["wb"]                      # (Cmid, Cout)
    scale = params["bn_scale"].reshape(Cout, 1)
    bias = params["bn_bias"].reshape(Cout, 1)

    # Free reshapes: stay in NCHW order, no concat / transpose HBM traffic.
    x1r = x1.reshape(N, C1, HW)
    x2r = x2.reshape(N, C2, HW)

    budget, vmem_limit = _vmem_budget()
    per_img = 2 * HW * (Cin + Cout) * 4    # double-buffered f32 in+out per image

    bt = None
    if force_path != "tiled":
        bt = _pick_batch_tile(N, per_img, budget)

    if bt is not None and force_path != "tiled":
        out_rows = _feature_fusion_fused(x1r, x2r, w1a, w1b, scale, bias,
                                         wa, jnp.transpose(wb), bt, vmem_limit)
    else:
        if hw_tile is not None:
            assert HW % hw_tile == 0 and (hw_tile % 128 == 0 or hw_tile == HW)
            thw = hw_tile
        else:
            row_bytes = 2 * 4 * max(Cin + Cout, 2 * Cout)
            thw = _pick_hw_tile(HW, row_bytes, budget)
            if thw is None and HW % 128 != 0:
                thw = HW if HW * row_bytes <= budget else None
        if thw is None:
            # TODO(synk): H*W too large for one block yet not tileable by 128;
            # fall back to the fused path with Bt=1 (may exceed the VMEM budget).
            out_rows = _feature_fusion_fused(x1r, x2r, w1a, w1b, scale, bias,
                                             wa, jnp.transpose(wb), 1,
                                             vmem_limit)
        else:
            out_rows = _feature_fusion_tiled(x1r, x2r, w1a, w1b, scale, bias,
                                             wa, wb, thw, vmem_limit)

    # (N, Cout, HW) -> NCHW, a free reshape (no transpose).
    return out_rows.reshape(N, Cout, H, W)


# ----------------------------------------------------------------------------
# Parameters & pure-JAX reference
# ----------------------------------------------------------------------------
def make_params(key, in_planes, out_planes, reduction=1, bn_eps=1e-5):
    """Deterministic synthetic parameters matching FeatureFusion.__init__."""
    kmid = out_planes // reduction
    k1, k2, k3, k4, k5, k6, k7 = jax.random.split(key, 7)
    # conv_1x1 weight: PyTorch (Cout, Cin, 1, 1) -> matmul layout (Cin, Cout)
    w1 = 0.1 * jax.random.normal(k1, (in_planes, out_planes), jnp.float32)
    # BatchNorm (eval-mode) params, folded into scale/bias
    gamma = 1.0 + 0.1 * jax.random.normal(k2, (out_planes,), jnp.float32)
    beta = 0.1 * jax.random.normal(k3, (out_planes,), jnp.float32)
    mean = 0.1 * jax.random.normal(k4, (out_planes,), jnp.float32)
    var = jnp.abs(jax.random.normal(k5, (out_planes,), jnp.float32)) + 0.5
    bn_scale = gamma / jnp.sqrt(var + bn_eps)
    bn_bias = beta - mean * bn_scale
    # channel-attention 1x1 convs (no bias, no BN)
    wa = 0.1 * jax.random.normal(k6, (out_planes, kmid), jnp.float32)
    wb = 0.1 * jax.random.normal(k7, (kmid, out_planes), jnp.float32)
    return {
        "w1": w1,
        "bn_scale": bn_scale.reshape(1, out_planes),
        "bn_bias": bn_bias.reshape(1, out_planes),
        "wa": wa,
        "wb": wb,
    }


def reference(x1, x2, params):
    """Pure-JAX reference of the same forward (for a sanity check)."""
    fm_in = jnp.concatenate([x1, x2], axis=1)                 # NCHW
    x = jnp.transpose(fm_in, (0, 2, 3, 1))                    # NHWC
    fm = jnp.einsum("nhwc,cd->nhwd", x, params["w1"])
    fm = fm * params["bn_scale"][0] + params["bn_bias"][0]
    fm = jnp.maximum(fm, 0.0)
    pooled = jnp.mean(fm, axis=(1, 2))                        # (N, Cout)
    h = jnp.maximum(pooled @ params["wa"], 0.0)
    se = jax.nn.sigmoid(h @ params["wb"])                     # (N, Cout)
    out = fm * (1.0 + se[:, None, None, :])
    return jnp.transpose(out, (0, 3, 1, 2))                   # NCHW


if __name__ == "__main__":
    # in_planes = 8 (two 4-channel inputs concatenated), out_planes = 8
    N, C, H, W = 2, 4, 16, 16
    in_planes, out_planes = 2 * C, 8

    key = jax.random.PRNGKey(0)
    kx1, kx2, kp = jax.random.split(key, 3)
    x1 = jax.random.normal(kx1, (N, C, H, W), jnp.float32)
    x2 = jax.random.normal(kx2, (N, C, H, W), jnp.float32)
    params = make_params(kp, in_planes, out_planes, reduction=1)

    ref = jax.block_until_ready(reference(x1, x2, params))

    # Default (fused, full-HW) path.
    out = jax.block_until_ready(feature_fusion(x1, x2, params))
    assert out.shape == (N, out_planes, H, W)
    assert jnp.max(jnp.abs(out - ref)) < 1e-4

    # Also exercise the HW-tiled two-pass fallback (used automatically when a
    # full-HW block would not fit VMEM, e.g. very large images on v7x).
    out_tiled = jax.block_until_ready(
        feature_fusion(x1, x2, params, force_path="tiled", hw_tile=128))
    assert out_tiled.shape == (N, out_planes, H, W)
    assert jnp.max(jnp.abs(out_tiled - ref)) < 1e-4

    print("KERNEL_OK")
</pallas_src>

<mosaic_0001>
module attributes {stable_mosaic.version = 11 : i64} {
  func.func @_fused_kernel(%arg0: i32, %arg1: memref<2x4x256xf32, #tpu.memory_space<vmem>>, %arg2: memref<2x4x256xf32, #tpu.memory_space<vmem>>, %arg3: memref<8x4xf32, #tpu.memory_space<vmem>>, %arg4: memref<8x4xf32, #tpu.memory_space<vmem>>, %arg5: memref<8x1xf32, #tpu.memory_space<vmem>>, %arg6: memref<8x1xf32, #tpu.memory_space<vmem>>, %arg7: memref<8x8xf32, #tpu.memory_space<vmem>>, %arg8: memref<8x8xf32, #tpu.memory_space<vmem>>, %arg9: memref<2x8x256xf32, #tpu.memory_space<vmem>>) attributes {dimension_semantics = [#tpu.dimension_semantics<parallel>], iteration_bounds = array<i64: 1>, scalar_prefetch = 0 : i64, scratch_operands = 0 : i64, tpu.core_type = #tpu.core_type<tc>, window_params = [{transform_indices = @transform_0, window_bounds = array<i64: 2, 4, 256>}, {transform_indices = @transform_1, window_bounds = array<i64: 2, 4, 256>}, {pipeline_mode = #tpu.pipeline_mode<synchronous>, transform_indices = @transform_2, window_bounds = array<i64: 8, 4>}, {pipeline_mode = #tpu.pipeline_mode<synchronous>, transform_indices = @transform_3, window_bounds = array<i64: 8, 4>}, {pipeline_mode = #tpu.pipeline_mode<synchronous>, transform_indices = @transform_4, window_bounds = array<i64: 8, 1>}, {pipeline_mode = #tpu.pipeline_mode<synchronous>, transform_indices = @transform_5, window_bounds = array<i64: 8, 1>}, {pipeline_mode = #tpu.pipeline_mode<synchronous>, transform_indices = @transform_6, window_bounds = array<i64: 8, 8>}, {pipeline_mode = #tpu.pipeline_mode<synchronous>, transform_indices = @transform_7, window_bounds = array<i64: 8, 8>}, {transform_indices = @transform_8, window_bounds = array<i64: 2, 8, 256>}]} {
    %c0 = arith.constant 0 : index
    %c0_0 = arith.constant 0 : index
    %0 = vector.load %arg3[%c0, %c0_0] : memref<8x4xf32, #tpu.memory_space<vmem>>, vector<8x4xf32>
    %c0_1 = arith.constant 0 : index
    %c0_2 = arith.constant 0 : index
    %1 = vector.load %arg4[%c0_1, %c0_2] : memref<8x4xf32, #tpu.memory_space<vmem>>, vector<8x4xf32>
    %c0_3 = arith.constant 0 : index
    %c0_4 = arith.constant 0 : index
    %2 = vector.load %arg5[%c0_3, %c0_4] : memref<8x1xf32, #tpu.memory_space<vmem>>, vector<8x1xf32>
    %c0_5 = arith.constant 0 : index
    %c0_6 = arith.constant 0 : index
    %3 = vector.load %arg6[%c0_5, %c0_6] : memref<8x1xf32, #tpu.memory_space<vmem>>, vector<8x1xf32>
    %c0_7 = arith.constant 0 : index
    %c0_8 = arith.constant 0 : index
    %4 = vector.load %arg7[%c0_7, %c0_8] : memref<8x8xf32, #tpu.memory_space<vmem>>, vector<8x8xf32>
    %c0_9 = arith.constant 0 : index
    %c0_10 = arith.constant 0 : index
    %5 = vector.load %arg8[%c0_9, %c0_10] : memref<8x8xf32, #tpu.memory_space<vmem>>, vector<8x8xf32>
    %c0_i32 = arith.constant 0 : i32
    %c2_i32 = arith.constant 2 : i32
    %6 = arith.addi %c0_i32, %c2_i32 : i32
    %c1_i32 = arith.constant 1 : i32
    scf.for %arg10 = %c0_i32 to %6 step %c1_i32  : i32 {
      %7 = arith.index_cast %arg10 : i32 to index
      %c0_12 = arith.constant 0 : index
      %c0_13 = arith.constant 0 : index
      %8 = vector.load %arg1[%7, %c0_12, %c0_13] : memref<2x4x256xf32, #tpu.memory_space<vmem>>, vector<1x4x256xf32>
      %9 = vector.shape_cast %8 : vector<1x4x256xf32> to vector<4x256xf32>
      %cst = arith.constant dense<0.000000e+00> : vector<8x256xf32>
      %10 = tpu.matmul %0, %9, %cst {dimension_numbers = #tpu.dot_dimension_numbers<[1], [0], [0], [1], [0, 0, 1, 1], [], []>} : vector<8x4xf32>, vector<4x256xf32>, vector<8x256xf32> -> vector<8x256xf32>
      %11 = arith.index_cast %arg10 : i32 to index
      %c0_14 = arith.constant 0 : index
      %c0_15 = arith.constant 0 : index
      %12 = vector.load %arg2[%11, %c0_14, %c0_15] : memref<2x4x256xf32, #tpu.memory_space<vmem>>, vector<1x4x256xf32>
      %13 = vector.shape_cast %12 : vector<1x4x256xf32> to vector<4x256xf32>
      %cst_16 = arith.constant dense<0.000000e+00> : vector<8x256xf32>
      %14 = tpu.matmul %1, %13, %cst_16 {dimension_numbers = #tpu.dot_dimension_numbers<[1], [0], [0], [1], [0, 0, 1, 1], [], []>} : vector<8x4xf32>, vector<4x256xf32>, vector<8x256xf32> -> vector<8x256xf32>
      %15 = arith.addf %10, %14 : vector<8x256xf32>
      %16 = vector.broadcast %2 : vector<8x1xf32> to vector<8x256xf32>
      %17 = arith.mulf %15, %16 : vector<8x256xf32>
      %18 = vector.broadcast %3 : vector<8x1xf32> to vector<8x256xf32>
      %19 = arith.addf %17, %18 : vector<8x256xf32>
      %cst_17 = arith.constant 0.000000e+00 : f32
      %20 = vector.broadcast %cst_17 : f32 to vector<8x256xf32>
      %21 = arith.maximumf %19, %20 : vector<8x256xf32>
      %cst_18 = arith.constant dense<0.000000e+00> : vector<8xf32>
      %22 = vector.multi_reduction <add>, %21, %cst_18 [1] : vector<8x256xf32> to vector<8xf32>
      %23 = vector.shape_cast %22 : vector<8xf32> to vector<8x1xf32>
      %cst_19 = arith.constant 2.560000e+02 : f32
      %24 = vector.broadcast %cst_19 : f32 to vector<8x1xf32>
      %25 = arith.divf %23, %24 : vector<8x1xf32>
      %26 = vector.broadcast %25 : vector<8x1xf32> to vector<8x8xf32>
      %27 = arith.mulf %4, %26 : vector<8x8xf32>
      %cst_20 = arith.constant dense<0.000000e+00> : vector<8xf32>
      %28 = vector.multi_reduction <add>, %27, %cst_20 [0] : vector<8x8xf32> to vector<8xf32>
      %29 = vector.shape_cast %28 : vector<8xf32> to vector<1x8xf32>
      %cst_21 = arith.constant 0.000000e+00 : f32
      %30 = vector.broadcast %cst_21 : f32 to vector<1x8xf32>
      %31 = arith.maximumf %29, %30 : vector<1x8xf32>
      %32 = vector.broadcast %31 : vector<1x8xf32> to vector<8x8xf32>
      %33 = arith.mulf %5, %32 : vector<8x8xf32>
      %cst_22 = arith.constant dense<0.000000e+00> : vector<8xf32>
      %34 = vector.multi_reduction <add>, %33, %cst_22 [1] : vector<8x8xf32> to vector<8xf32>
      %35 = vector.shape_cast %34 : vector<8xf32> to vector<8x1xf32>
      %36 = arith.negf %35 : vector<8x1xf32>
      %37 = math.exp %36 : vector<8x1xf32>
      %cst_23 = arith.constant 1.000000e+00 : f32
      %38 = vector.broadcast %cst_23 : f32 to vector<8x1xf32>
      %39 = arith.addf %38, %37 : vector<8x1xf32>
      %40 = arith.divf %38, %39 : vector<8x1xf32>
      %cst_24 = arith.constant 1.000000e+00 : f32
      %41 = vector.broadcast %cst_24 : f32 to vector<8x1xf32>
      %42 = arith.addf %41, %40 : vector<8x1xf32>
      %43 = vector.broadcast %42 : vector<8x1xf32> to vector<8x256xf32>
      %44 = arith.mulf %21, %43 : vector<8x256xf32>
      %45 = arith.index_cast %arg10 : i32 to index
      %c0_25 = arith.constant 0 : index
      %c0_26 = arith.constant 0 : index
      %46 = vector.load %arg9[%45, %c0_25, %c0_26] : memref<2x8x256xf32, #tpu.memory_space<vmem>>, vector<1x8x256xf32>
      %47 = vector.shape_cast %46 : vector<1x8x256xf32> to vector<8x256xf32>
      %48 = vector.shape_cast %44 : vector<8x256xf32> to vector<1x8x256xf32>
      tpu.vector_store %arg9[%45, %c0_25, %c0_26], %48 {strides = array<i32>} : memref<2x8x256xf32, #tpu.memory_space<vmem>>, vector<1x8x256xf32>,
    }
    %c2_i32_11 = arith.constant 2 : i32
    return
  }
  func.func @transform_0(%arg0: i32) -> (i32, i32, i32) {
    %c0_i32 = arith.constant 0 : i32
    %c0_i32_0 = arith.constant 0 : i32
    %c0_i32_1 = arith.constant 0 : i32
    return %arg0, %c0_i32, %c0_i32_0 : i32, i32, i32
  }
  func.func @transform_1(%arg0: i32) -> (i32, i32, i32) {
    %c0_i32 = arith.constant 0 : i32
    %c0_i32_0 = arith.constant 0 : i32
    %c0_i32_1 = arith.constant 0 : i32
    return %arg0, %c0_i32, %c0_i32_0 : i32, i32, i32
  }
  func.func @transform_2(%arg0: i32) -> (i32, i32) {
    %c0_i32 = arith.constant 0 : i32
    %c0_i32_0 = arith.constant 0 : i32
    %c0_i32_1 = arith.constant 0 : i32
    return %c0_i32, %c0_i32_0 : i32, i32
  }
  func.func @transform_3(%arg0: i32) -> (i32, i32) {
    %c0_i32 = arith.constant 0 : i32
    %c0_i32_0 = arith.constant 0 : i32
    %c0_i32_1 = arith.constant 0 : i32
    return %c0_i32, %c0_i32_0 : i32, i32
  }
  func.func @transform_4(%arg0: i32) -> (i32, i32) {
    %c0_i32 = arith.constant 0 : i32
    %c0_i32_0 = arith.constant 0 : i32
    %c0_i32_1 = arith.constant 0 : i32
    return %c0_i32, %c0_i32_0 : i32, i32
  }
  func.func @transform_5(%arg0: i32) -> (i32, i32) {
    %c0_i32 = arith.constant 0 : i32
    %c0_i32_0 = arith.constant 0 : i32
    %c0_i32_1 = arith.constant 0 : i32
    return %c0_i32, %c0_i32_0 : i32, i32
  }
  func.func @transform_6(%arg0: i32) -> (i32, i32) {
    %c0_i32 = arith.constant 0 : i32
    %c0_i32_0 = arith.constant 0 : i32
    %c0_i32_1 = arith.constant 0 : i32
    return %c0_i32, %c0_i32_0 : i32, i32
  }
  func.func @transform_7(%arg0: i32) -> (i32, i32) {
    %c0_i32 = arith.constant 0 : i32
    %c0_i32_0 = arith.constant 0 : i32
    %c0_i32_1 = arith.constant 0 : i32
    return %c0_i32, %c0_i32_0 : i32, i32
  }
  func.func @transform_8(%arg0: i32) -> (i32, i32, i32) {
    %c0_i32 = arith.constant 0 : i32
    %c0_i32_0 = arith.constant 0 : i32
    %c0_i32_1 = arith.constant 0 : i32
    return %arg0, %c0_i32, %c0_i32_0 : i32, i32, i32
  }
}

</mosaic_0001>

<bundles_post_ra>
// kernel: tpu_custom_call.1
= control target key start
LH: loop header
LB: loop body
LE: loop exit
PB: predicated region body
PF: predicated region fallthrough
CT: control target
= control target key end

     0   :  { %13 = vsyncpa [#allocation3], 0  ;;  %s468_s0 = inlined_call_operand.vmem [shape: f32[2,4,256], index: 0, kind: input, shape index: {}]   ;;  %s469_s1 = inlined_call_operand.vmem [shape: f32[2,4,256], index: 1, kind: input, shape index: {}]   ;;  %s470_s2 = inlined_call_operand.vmem [shape: f32[8,4], index: 2, kind: input, shape index: {}]   ;;  %s471_s3 = inlined_call_operand.vmem [shape: f32[8,4], index: 3, kind: input, shape index: {}]   ;;  %s472_s4 = inlined_call_operand.vmem [shape: f32[8,1], index: 4, kind: input, shape index: {}]   ;;  %s473_s5 = inlined_call_operand.vmem [shape: f32[8,1], index: 5, kind: input, shape index: {}]   ;;  %s474_s6 = inlined_call_operand.vmem [shape: f32[8,8], index: 6, kind: input, shape index: {}]   ;;  %s475_s7 = inlined_call_operand.vmem [shape: f32[8,8], index: 7, kind: input, shape index: {}]   ;;  %s476_s8 = inlined_call_operand.hbm [shape: f32[2,8,256], index: 8, kind: output, shape index: {}]  }
   0x1   :  { %v407_v0 = vld [vmem:[%s470_s2] sm:$0xff] }
   0x2   :  { %v412_v1 = vld [vmem:[%s471_s3] sm:$0xff]  ;;  %s434_s3 = smov 0  }
   0x3   :  { %v417_v2 = vld [vmem:[%s472_s4] sm:$0xff] }
   0x4   :  { %v422_v3 = vld [vmem:[%s473_s5] sm:$0xff] }
   0x5   :  { %v427_v4 = vld [vmem:[%s474_s6] sm:$0xff] }
   0x6   :  { %v432_v5 = vld [vmem:[%s475_s7] sm:$0xff] }
   0x7 LB: > { %v354_v6 = vmov 0.0   ;;  %s297_s4 = sshll.u32 %s352_s3, 3  ;;  %v355_v7 = vmov 0   ;;  %vm55_vm0 = vcmask 1043456   ;;  %vm51_vm1 = vcmask 31744   ;;  %s299_s19 = sshll.u32 %s352_s3, 4  ;;  %s352_s3 = sphi %s434_s3, %s41_s3  }
   0x8   : > { %124 = vmatprep.mubr.f32.mxu1 %v354_v6  ;;  %204 = vmatprep.mubr.f32.mxu0 %v354_v6  ;;  %s47_s16 = scalar_lea.vmem %s469_s1, %s297_s4  ;;  %s44_s18 = scalar_lea.vmem %s468_s0, %s297_s4  ;;  %vm233_vm2 = vcmask 64512  }
   0x9   : > { %315 = vset.pattern.permute.xlu0 %v355_v7  ;;  %v48_v8 = vld [vmem:[%s47_s16] sm:$0xff]  ;;  %s256_s20 = scalar_lea.vmem [#allocation2], %s299_s19  ;;  %s41_s3 = sadd.s32 1, %s352_s3  }
   0xa   : > { %213 = vperm.xlu0 %315, %v417_v2   ;;  %v50_v9 = vcombine.high %v48_v8, %v48_v8  ;;  %v45_v10 = vld [vmem:[%s44_s18] sm:$0xff]  ;;  %p38_p0 = scmp.ge.s32.totalorder %s41_s3, 2  }
   0xb   : > { %v132_v11 = vcombine.high %v45_v10, %v45_v10  ;;  %s356_s21 = smov (%p38_p0), [#allocation2]  }
   0xc   : > { %289 = vmatprep.subr.msk.mxu1 %vm55_vm0, %v50_v9  ;;  %s264_s22 = sshll.u32 (%p38_p0), %s356_s21, 4  ;;  %s265_s22 = int_to_ptr.vmem [resolvable:$true] %s264_s22 }
   0xd   : > { %292 = vmatprep.subr.msk.mxu0 %vm55_vm0, %v132_v11  ;;  %290 = vmatpush1.msk.msra.mxu1 %vm55_vm0, %v48_v8  ;;  %s322_s23 = scalar_lea.vmem (%p38_p0), %s265_s22, 512  ;;  %p327_p2 = scmp.lt.s32.totalorder (%p38_p0), %s265_s22, %s265_s22 }
   0xe   : > { %220 = vperm.xlu0 %315, %v422_v3   ;;  %293 = vmatpush1.msk.msra.mxu0 %vm55_vm0, %v45_v10  ;;  %p323_p1 = scmp.ne.s32.totalorder (%p38_p0), %s265_s22, %s322_s23  ;;  %p328_p3 = scmp.lt.s32.totalorder (%p38_p0), %s322_s23, %s322_s23 }
   0xf   : > { %291 = vmatmul.mubr.msk.f32.vlgmr.msra.gmra.mrb[0].mxu1 %vm51_vm1, %v412_v1  ;;  %294 = vmatmul.mubr.msk.f32.vlgmr.msra.gmra.mrb[0].mxu0 %vm51_vm1, %v407_v0 }
  0x10   :  { %p329_p4 = por (%p38_p0), %p328_p3, %p327_p2 }
  0x12   :  { %p330_p5 = pnand (%p38_p0), %p329_p4, %p323_p1 }
  0x89   : > { %v214_v12 = vpop.permute.xlu0 %213 }
  0x8d   : > { %v221_v20 = vpop.permute.xlu0 %220 }
  0xe2   : > { %v126_v13 = vpop.f32.mrb[0].mxu1  ;;  %v206_v14 = vpop.f32.mrb[0].mxu0 }
  0xe3   : > { %v128_v15 = vpop.f32.mrb[1].mxu1  ;;  %v207_v16 = vadd.f32 %v206_v14, %v126_v13  ;;  %v208_v17 = vpop.f32.mrb[1].mxu0 }
  0xe4   : > { %v209_v18 = vadd.f32 %v208_v17, %v128_v15 }
  0xe5   : > { %v216_v19 = vmul.f32 %v214_v12, %v207_v16 }
  0xe6   : > { %v217_v21 = vmul.f32 %v214_v12, %v209_v18 }
  0xe7   : > { %v223_v22 = vadd.f32 %v221_v20, %v216_v19 }
  0xe8   : > { %v224_v23 = vadd.f32 %v221_v20, %v217_v21 }
  0xe9   : > { %v225_v24 = vmax.f32 %v223_v22, 0.0 }
  0xea   : > { %v226_v25 = vmax.f32 %v224_v23, 0.0 }
  0xec   : > { %v227_v26 = vadd.f32 %v226_v25, %v225_v24 }
  0xee   : > { %228 = vadd.xlane.f32.xlu1 %v227_v26 }
 0x17b   : > { %v229_v27 = vpop.xlane.xlu1 %228 }
 0x17c   : > { %v231_v28 = vmul.f32 0.00390625, %v229_v27 }
 0x17e   : > { %v232_v29 = vmul.f32 %v231_v28, %v427_v4 }
 0x180   : > { %v234_v30 = vsel %vm233_vm2, %v232_v29, 0.0 }
 0x181   : > { %v235_v31 = vrot.slane %v234_v30, 4 }
 0x183   : > { %v236_v32 = vadd.f32 %v235_v31, %v234_v30 }
 0x185   : > { %v237_v33 = vrot.slane %v236_v32, 2 }
 0x187   : > { %v238_v34 = vadd.f32 %v237_v33, %v236_v32 }
 0x189   : > { %v239_v35 = vrot.slane %v238_v34, 1 }
 0x18b   : > { %v240_v36 = vadd.f32 %v239_v35, %v238_v34 }
 0x18d   : > { %v241_v37 = vmax.f32 %v240_v36, 0.0 }
 0x18f   : > { %v242_v38 = vmul.f32 %v241_v37, %v432_v5 }
 0x191   : > { %v243_v39 = vsel %vm233_vm2, %v242_v38, 0.0 }
 0x192   : > { %244 = vadd.xlane.f32.xlu1 %v243_v39 }
 0x21f   : > { %v245_v40 = vpop.xlane.xlu1 %244 }
 0x220   : > { %v295_v41 = vmul.f32 -1.442695, %v245_v40 }
 0x222   : > { %318 = vpow2.f32 %v295_v41 }
 0x22c   : > { %v319_v42 = vpop.eup %318 }
 0x22d   : > { %v249_v43 = vadd.f32 1.0, %v319_v42 }
 0x22f   : > { %320 = vrcp.f32 %v249_v43 }
 0x238   :  { %40 = sbr.rel (!%p38_p0) target bundleno = 7 (0x7), region = 62 }
 0x239   : > { %v321_v44 = vpop.eup %320 }
 0x23a   : > { %v252_v45 = vadd.f32 1.0, %v321_v44 }
 0x23c   : > { %v253_v46 = vmul.f32 %v252_v45, %v225_v24  ;;  %v254_v47 = vmul.f32 %v252_v45, %v226_v25 }
 0x23e   : > { %257 = vst [vmem:[%s256_s20] sm:$0xff] %v253_v46  ;;  %258 = vst [vmem:[%s256_s20 + $0x8] sm:$0xff] %v254_v47 }
 0x23f   :  { %333 = shalt.err (!%p330_p5)
}
 0x240   :  { %s334_s26 = scalar_lea.hbm %s476_s8, 512 }
 0x241   :  { %p335_p6 = scmp.ne.s32.totalorder %s476_s8, %s334_s26  ;;  %p338_p7 = scmp.lt.u32.totalorder %s334_s26, %s476_s8 }
 0x243   :  { %p340_p8 = pnand %p338_p7, %p335_p6 }
 0x245   :  { %343 = shalt.err (!%p340_p8)
}
 0x246   :  { %s357_s0 = smov 256   ;;  %s358_s1 = smov 16  }
 0x247   :  { %270 = dma.vmem_to_hbm [thread:$0]  %s265_s22, 512, %s476_s8, [#allocation3], %s357_s0, %s357_s0, %s358_s1  }
 0x248   :  { %348 = dma.done.wait [#allocation3], 512  }
 0x249   :  { %349 = vsyncadd [#allocation3], 4294966784 }
 0x24a   :  { %274 = vsyncpa [#allocation3], 1 }

</bundles_post_ra>
